<compile_context>
chip_gen: v7x
topology: tpu7x:2x2x1
jax: 0.10.0
libtpu: 0.0.40
codegen_flags: <defaults>
</compile_context>

<pallas_src>
import functools

import jax
import jax.numpy as jnp
from jax.experimental import pallas as pl
from jax.experimental.pallas import tpu as pltpu


_VMEM_BUDGET = 40 * 1024 * 1024  # conservative: v7x has only 64 MiB physical VMEM


def _round_up(x, m):
    return ((x + m - 1) // m) * m


def _choose_tiles(n, c_pad, a_itemsize, out_itemsize, n_outs, use_scratch):
    """Pick (t_m, t_k, n_pad, vmem_limit_bytes)."""
    # Row tile: keep >= 2 row tiles so the "parallel" axis can shard across
    # v7x's two TensorCores; bigger tiles for bigger graphs.
    if n <= 256:
        t_m = 128
    elif n <= 1024:
        t_m = 256
    else:
        t_m = 512
    n_pad = _round_up(max(n, 1), 2 * t_m)

    # Fixed VMEM: resident H (assume double-buffered), double-buffered outputs,
    # optional f32 accumulator scratch, bias + slack.
    fixed = (2 * n_pad * c_pad * a_itemsize
             + 2 * n_outs * t_m * c_pad * out_itemsize
             + (t_m * c_pad * 4 if use_scratch else 0)
             + 2 * 128 * c_pad * 4)
    per_tk = 2 * t_m * a_itemsize  # 2 streamed A buffers per unit of t_k

    # Reduction tile: largest multiple of 128 dividing n_pad that fits budget;
    # ideally t_k == n_pad so the k grid axis collapses to a single step.
    t_k = 128
    for cand in range(n_pad, 127, -128):
        if n_pad % cand == 0 and fixed + per_tk * cand <= _VMEM_BUDGET:
            t_k = cand
            break

    required = fixed + per_tk * t_k
    vmem_limit = int(min(max(required + (8 << 20), 32 << 20), 56 << 20))
    return t_m, t_k, n_pad, vmem_limit


def _gcn_agg_kernel(a_ref, h_ref, b_ref, *rest, t_k, apply_act, use_scratch):
    """acc += A_tile @ H_slab; finalize with bias (+ ReLU) on the last k step."""
    if use_scratch:
        out_refs, acc_scratch = rest[:-1], rest[-1]
    else:
        out_refs, acc_scratch = rest, None
    if apply_act:
        out_ref, emb_ref = out_refs
    else:
        (emb_ref,) = out_refs
        out_ref = None
    # emb_ref is k-resident (its index map ignores k), so when it is f32 we
    # accumulate straight into it and skip the scratch buffer entirely.
    acc_ref = acc_scratch if use_scratch else emb_ref

    k = pl.program_id(1)

    @pl.when(k == 0)
    def _():
        acc_ref[...] = jnp.zeros_like(acc_ref)

    start = pl.multiple_of(k * t_k, t_k)
    h_blk = h_ref[pl.ds(start, t_k), :]           # slice of the VMEM-resident H
    acc_ref[...] += jnp.dot(a_ref[...], h_blk, preferred_element_type=jnp.float32)

    @pl.when(k == pl.num_programs(1) - 1)
    def _():
        emb = acc_ref[...].astype(jnp.float32) + b_ref[...]   # f32 epilogue (v5e-safe)
        emb_ref[...] = emb.astype(emb_ref.dtype)
        if apply_act:
            out_ref[...] = jnp.maximum(emb, 0.0).astype(out_ref.dtype)


def decoder_layer_forward(
    x, edge_index, edge_weight, weight, bias, *, act="relu",
    matmul_dtype=jnp.bfloat16,
):
    """Forward pass of DecoderLayer.

    Returns (act(conv(x)), conv(x)); if act is None both outputs are conv(x),
    matching the PyTorch module.
    """
    n = x.shape[0]
    c_out = weight.shape[0]
    f32 = jnp.float32
    out_dtype = x.dtype

    # ---- gcn_norm glue (f32): add_remaining_self_loops(fill=2.0), sym-normalize ----
    # PyG removes existing self-loop edges and re-adds exactly one self-loop per
    # node whose weight is the existing self-loop weight (if present) else 2.0.
    row0, col0 = edge_index[0], edge_index[1]
    ew = edge_weight.astype(f32)
    self_mask = row0 == col0
    loop_w = jnp.full((n,), 2.0, dtype=f32)
    loop_w = loop_w.at[jnp.where(self_mask, row0, n)].set(ew, mode="drop")
    w_edge = jnp.where(self_mask, 0.0, ew)

    deg = jnp.zeros((n,), f32).at[col0].add(w_edge) + loop_w
    dis = jnp.where(deg > 0, jax.lax.rsqrt(jnp.maximum(deg, 1e-30)), 0.0)
    norm_e = dis[row0] * w_edge * dis[col0]
    norm_l = dis * loop_w * dis

    # ---- tiling / padding decisions ----
    c_pad = _round_up(c_out, 128)
    a_itemsize = jnp.dtype(matmul_dtype).itemsize
    out_itemsize = jnp.dtype(out_dtype).itemsize
    apply_act = act is not None
    n_outs = 2 if apply_act else 1
    use_scratch = out_dtype != jnp.float32   # need f32 scratch only for narrow outputs

    t_m, t_k, n_pad, vmem_limit = _choose_tiles(
        n, c_pad, a_itemsize, out_itemsize, n_outs, use_scratch)

    # ---- dense normalized adjacency, built directly at padded shape & dtype ----
    # out[i] = sum_{e: col[e]==i} norm[e] * h[row[e]]  -> adj[col, row]
    adj = jnp.zeros((n_pad, n_pad), matmul_dtype)
    adj = adj.at[col0, row0].add(norm_e.astype(matmul_dtype))
    diag = jnp.arange(n)
    adj = adj.at[diag, diag].add(norm_l.astype(matmul_dtype))

    # ---- feature transform, computed once (kept out of the streamed path) ----
    h = jnp.dot(x.astype(f32), weight.astype(f32).T)           # [N, C_out] f32
    h_p = jnp.zeros((n_pad, c_pad), matmul_dtype).at[:n, :c_out].set(
        h.astype(matmul_dtype))
    b_p = jnp.zeros((1, c_pad), f32).at[0, :c_out].set(bias.astype(f32))

    grid = (n_pad // t_m, n_pad // t_k)        # (row tiles, reduction tiles)

    out_block = pl.BlockSpec((t_m, c_pad), lambda i, k: (i, 0))
    out_shapes, out_specs = [], []
    if apply_act:
        out_shapes.append(jax.ShapeDtypeStruct((n_pad, c_pad), out_dtype))   # out
        out_specs.append(out_block)
    out_shapes.append(jax.ShapeDtypeStruct((n_pad, c_pad), out_dtype))       # emb
    out_specs.append(out_block)

    scratch = [pltpu.VMEM((t_m, c_pad), jnp.float32)] if use_scratch else []

    cost = pl.CostEstimate(
        flops=2 * n_pad * n_pad * c_pad,
        transcendentals=0,
        bytes_accessed=(n_pad * n_pad * a_itemsize
                        + n_pad * c_pad * a_itemsize
                        + n_outs * n_pad * c_pad * out_itemsize),
    )

    kernel = functools.partial(
        _gcn_agg_kernel, t_k=t_k, apply_act=apply_act, use_scratch=use_scratch)

    results = pl.pallas_call(
        kernel,
        out_shape=tuple(out_shapes),
        grid_spec=pltpu.PrefetchScalarGridSpec(
            num_scalar_prefetch=0,
            grid=grid,
            in_specs=[
                pl.BlockSpec((t_m, t_k), lambda i, k: (i, k)),       # A (streamed)
                pl.BlockSpec((n_pad, c_pad), lambda i, k: (0, 0)),   # H (VMEM-resident)
                pl.BlockSpec((1, c_pad), lambda i, k: (0, 0)),       # bias (resident)
            ],
            out_specs=tuple(out_specs),
            scratch_shapes=scratch,
        ),
        compiler_params=pltpu.CompilerParams(
            dimension_semantics=("parallel", "arbitrary"),
            vmem_limit_bytes=vmem_limit,
        ),
        cost_estimate=cost,
    )(adj, h_p, b_p)

    if apply_act:
        out_p, emb_p = results
    else:
        (emb_p,) = results
        out_p = emb_p

    emb = emb_p[:n, :c_out]
    out = out_p[:n, :c_out]
    return out, emb


def _reference_forward(x, edge_index, edge_weight, weight, bias, *, act="relu"):
    """Plain-JAX reference mirroring PyG GCNConv(improved=True) semantics."""
    n = x.shape[0]
    f32 = jnp.float32
    row0, col0 = edge_index[0], edge_index[1]
    ew = edge_weight.astype(f32)
    self_mask = row0 == col0
    loop_w = jnp.full((n,), 2.0, f32)
    loop_w = loop_w.at[jnp.where(self_mask, row0, n)].set(ew, mode="drop")
    w_edge = jnp.where(self_mask, 0.0, ew)
    deg = jnp.zeros((n,), f32).at[col0].add(w_edge) + loop_w
    dis = jnp.where(deg > 0, jax.lax.rsqrt(jnp.maximum(deg, 1e-30)), 0.0)
    norm_e = dis[row0] * w_edge * dis[col0]
    norm_l = dis * loop_w * dis
    h = x.astype(f32) @ weight.astype(f32).T
    agg = jnp.zeros((n, weight.shape[0]), f32).at[col0].add(norm_e[:, None] * h[row0])
    agg = agg + norm_l[:, None] * h
    emb = agg + bias.astype(f32)[None, :]
    out = jnp.maximum(emb, 0.0) if act is not None else emb
    return out.astype(x.dtype), emb.astype(x.dtype)


if __name__ == "__main__":
    key = jax.random.PRNGKey(0)

    def make_graph(k, n, c_in, c_out, e):
        k_x, k_w, k_b, k_ew, k_src, k_dst = jax.random.split(k, 6)
        x = jax.random.normal(k_x, (n, c_in), dtype=jnp.float32)
        src = jax.random.randint(k_src, (e,), 0, n, dtype=jnp.int32)
        dst = jax.random.randint(k_dst, (e,), 0, n, dtype=jnp.int32)
        dst = jnp.where(dst == src, (dst + 1) % n, dst)          # no self loops
        edge_index = jnp.stack([src, dst], axis=0)               # [2, E]
        edge_weight = jax.random.uniform(k_ew, (e,), jnp.float32, 0.5, 1.5)
        bound = (6.0 / (c_in + c_out)) ** 0.5
        weight = jax.random.uniform(k_w, (c_out, c_in), jnp.float32, -bound, bound)
        bias = 0.1 * jax.random.normal(k_b, (c_out,), jnp.float32)
        return x, edge_index, edge_weight, weight, bias

    # ---- case 1: tiny module-default-like shape, exercise both dtypes and acts ----
    key, sub = jax.random.split(key)
    x, ei, ew, w, b = make_graph(sub, n=8, c_in=4, c_out=32, e=16)

    for act in ("relu", None):
        ref_out, ref_emb = _reference_forward(x, ei, ew, w, b, act=act)

        out, emb = decoder_layer_forward(
            x, ei, ew, w, b, act=act, matmul_dtype=jnp.float32)
        jax.block_until_ready(out)
        assert jnp.allclose(out, ref_out, atol=1e-2, rtol=1e-2)
        assert jnp.allclose(emb, ref_emb, atol=1e-2, rtol=1e-2)

        out, emb = decoder_layer_forward(x, ei, ew, w, b, act=act)  # bf16 streamed
        jax.block_until_ready(out)
        assert jnp.allclose(out, ref_out, atol=5e-2, rtol=5e-2)
        assert jnp.allclose(emb, ref_emb, atol=5e-2, rtol=5e-2)
        if act is None:
            assert jnp.allclose(out, emb)

    # ---- case 2: larger graph to exercise multiple row tiles ----
    key, sub = jax.random.split(key)
    x2, ei2, ew2, w2, b2 = make_graph(sub, n=200, c_in=16, c_out=64, e=500)
    ref_out2, ref_emb2 = _reference_forward(x2, ei2, ew2, w2, b2, act="relu")
    out2, emb2 = decoder_layer_forward(x2, ei2, ew2, w2, b2, act="relu")
    jax.block_until_ready(out2)
    assert jnp.allclose(out2, ref_out2, atol=5e-2, rtol=5e-2)
    assert jnp.allclose(emb2, ref_emb2, atol=5e-2, rtol=5e-2)

    # ---- case 3: bf16 activations exercise the f32-scratch accumulator path ----
    x3 = x2.astype(jnp.bfloat16)
    ref_out3, ref_emb3 = _reference_forward(x3, ei2, ew2, w2, b2, act="relu")
    out3, emb3 = decoder_layer_forward(x3, ei2, ew2, w2, b2, act="relu")
    jax.block_until_ready(out3)
    assert jnp.allclose(out3.astype(jnp.float32), ref_out3.astype(jnp.float32),
                        atol=1e-1, rtol=1e-1)
    assert jnp.allclose(emb3.astype(jnp.float32), ref_emb3.astype(jnp.float32),
                        atol=1e-1, rtol=1e-1)

    print("KERNEL_OK")
</pallas_src>

<mosaic_0001>
module attributes {stable_mosaic.version = 11 : i64} {
  func.func @_gcn_agg_kernel(%arg0: i32, %arg1: i32, %arg2: memref<128x256xf32, #tpu.memory_space<vmem>>, %arg3: memref<256x128xf32, #tpu.memory_space<vmem>>, %arg4: memref<1x128xf32, #tpu.memory_space<vmem>>, %arg5: memref<128x128xf32, #tpu.memory_space<vmem>>, %arg6: memref<128x128xf32, #tpu.memory_space<vmem>>) attributes {dimension_semantics = [#tpu.dimension_semantics<parallel>, #tpu.dimension_semantics<arbitrary>], iteration_bounds = array<i64: 2, 1>, scalar_prefetch = 0 : i64, scratch_operands = 0 : i64, tpu.core_type = #tpu.core_type<tc>, window_params = [{transform_indices = @transform_0, window_bounds = array<i64: 128, 256>}, {pipeline_mode = #tpu.pipeline_mode<synchronous>, transform_indices = @transform_1, window_bounds = array<i64: 256, 128>}, {pipeline_mode = #tpu.pipeline_mode<synchronous>, transform_indices = @transform_2, window_bounds = array<i64: 1, 128>}, {transform_indices = @transform_3, window_bounds = array<i64: 128, 128>}, {transform_indices = @transform_4, window_bounds = array<i64: 128, 128>}]} {
    %c0_i32 = arith.constant 0 : i32
    %0 = arith.cmpi eq, %arg1, %c0_i32 : i32
    %1 = arith.extui %0 : i1 to i32
    %c0_i32_0 = arith.constant 0 : i32
    %2 = arith.cmpi ne, %1, %c0_i32_0 : i32
    scf.if %2 {
      %cst_9 = arith.constant 0.000000e+00 : f32
      %15 = vector.broadcast %cst_9 : f32 to vector<128x128xf32>
      %c0_10 = arith.constant 0 : index
      %c0_11 = arith.constant 0 : index
      %16 = vector.load %arg6[%c0_10, %c0_11] : memref<128x128xf32, #tpu.memory_space<vmem>>, vector<128x128xf32>
      tpu.vector_store %arg6[%c0_10, %c0_11], %15 {strides = array<i32>} : memref<128x128xf32, #tpu.memory_space<vmem>>, vector<128x128xf32>,
    } else {
    }
    %c256_i32 = arith.constant 256 : i32
    %3 = arith.muli %arg1, %c256_i32 : i32
    %4 = tpu.assume_multiple %3, 256 : i32
    %5 = arith.index_cast %4 : i32 to index
    %c0 = arith.constant 0 : index
    %6 = vector.load %arg3[%5, %c0] : memref<256x128xf32, #tpu.memory_space<vmem>>, vector<256x128xf32>
    %c0_1 = arith.constant 0 : index
    %c0_2 = arith.constant 0 : index
    %7 = vector.load %arg6[%c0_1, %c0_2] : memref<128x128xf32, #tpu.memory_space<vmem>>, vector<128x128xf32>
    %c0_3 = arith.constant 0 : index
    %c0_4 = arith.constant 0 : index
    %8 = vector.load %arg2[%c0_3, %c0_4] : memref<128x256xf32, #tpu.memory_space<vmem>>, vector<128x256xf32>
    %cst = arith.constant dense<0.000000e+00> : vector<128x128xf32>
    %9 = tpu.matmul %8, %6, %cst {dimension_numbers = #tpu.dot_dimension_numbers<[1], [0], [0], [1], [0, 0, 1, 1], [], []>} : vector<128x256xf32>, vector<256x128xf32>, vector<128x128xf32> -> vector<128x128xf32>
    %10 = arith.addf %7, %9 : vector<128x128xf32>
    %c0_5 = arith.constant 0 : index
    %c0_6 = arith.constant 0 : index
    %11 = vector.load %arg6[%c0_5, %c0_6] : memref<128x128xf32, #tpu.memory_space<vmem>>, vector<128x128xf32>
    tpu.vector_store %arg6[%c0_5, %c0_6], %10 {strides = array<i32>} : memref<128x128xf32, #tpu.memory_space<vmem>>, vector<128x128xf32>,
    %c0_i32_7 = arith.constant 0 : i32
    %12 = arith.cmpi eq, %arg1, %c0_i32_7 : i32
    %13 = arith.extui %12 : i1 to i32
    %c0_i32_8 = arith.constant 0 : i32
    %14 = arith.cmpi ne, %13, %c0_i32_8 : i32
    scf.if %14 {
      %c0_9 = arith.constant 0 : index
      %c0_10 = arith.constant 0 : index
      %15 = vector.load %arg6[%c0_9, %c0_10] : memref<128x128xf32, #tpu.memory_space<vmem>>, vector<128x128xf32>
      %c0_11 = arith.constant 0 : index
      %c0_12 = arith.constant 0 : index
      %16 = vector.load %arg4[%c0_11, %c0_12] : memref<1x128xf32, #tpu.memory_space<vmem>>, vector<1x128xf32>
      %17 = vector.broadcast %16 : vector<1x128xf32> to vector<128x128xf32>
      %18 = arith.addf %15, %17 : vector<128x128xf32>
      %c0_13 = arith.constant 0 : index
      %c0_14 = arith.constant 0 : index
      %19 = vector.load %arg6[%c0_13, %c0_14] : memref<128x128xf32, #tpu.memory_space<vmem>>, vector<128x128xf32>
      tpu.vector_store %arg6[%c0_13, %c0_14], %18 {strides = array<i32>} : memref<128x128xf32, #tpu.memory_space<vmem>>, vector<128x128xf32>,
      %cst_15 = arith.constant 0.000000e+00 : f32
      %20 = vector.broadcast %cst_15 : f32 to vector<128x128xf32>
      %21 = arith.maximumf %18, %20 : vector<128x128xf32>
      %c0_16 = arith.constant 0 : index
      %c0_17 = arith.constant 0 : index
      %22 = vector.load %arg5[%c0_16, %c0_17] : memref<128x128xf32, #tpu.memory_space<vmem>>, vector<128x128xf32>
      tpu.vector_store %arg5[%c0_16, %c0_17], %21 {strides = array<i32>} : memref<128x128xf32, #tpu.memory_space<vmem>>, vector<128x128xf32>,
    } else {
    }
    return
  }
  func.func @transform_0(%arg0: i32, %arg1: i32) -> (i32, i32) {
    %c0_i32 = arith.constant 0 : i32
    return %arg0, %arg1 : i32, i32
  }
  func.func @transform_1(%arg0: i32, %arg1: i32) -> (i32, i32) {
    %c0_i32 = arith.constant 0 : i32
    %c0_i32_0 = arith.constant 0 : i32
    %c0_i32_1 = arith.constant 0 : i32
    return %c0_i32, %c0_i32_0 : i32, i32
  }
  func.func @transform_2(%arg0: i32, %arg1: i32) -> (i32, i32) {
    %c0_i32 = arith.constant 0 : i32
    %c0_i32_0 = arith.constant 0 : i32
    %c0_i32_1 = arith.constant 0 : i32
    return %c0_i32, %c0_i32_0 : i32, i32
  }
  func.func @transform_3(%arg0: i32, %arg1: i32) -> (i32, i32) {
    %c0_i32 = arith.constant 0 : i32
    %c0_i32_0 = arith.constant 0 : i32
    return %arg0, %c0_i32 : i32, i32
  }
  func.func @transform_4(%arg0: i32, %arg1: i32) -> (i32, i32) {
    %c0_i32 = arith.constant 0 : i32
    %c0_i32_0 = arith.constant 0 : i32
    return %arg0, %c0_i32 : i32, i32
  }
}

</mosaic_0001>

<bundles_post_ra>
// kernel: tpu_custom_call.1
= control target key start
LH: loop header
LB: loop body
LE: loop exit
PB: predicated region body
PF: predicated region fallthrough
CT: control target
= control target key end

     0   :  { %10 = vsyncpa [#allocation3], 0  ;;  %s1598_s0 = inlined_call_operand.hbm [shape: f32[256,256], index: 0, kind: input, shape index: {}]   ;;  %s1599_s1 = inlined_call_operand.hbm [shape: f32[256,128], index: 1, kind: input, shape index: {}]   ;;  %s1600_s2 = inlined_call_operand.vmem [shape: f32[1,128], index: 2, kind: input, shape index: {}]   ;;  %s1601_s3 = inlined_call_operand.hbm [shape: f32[256,128], index: 3, kind: output, shape index: {0}]   ;;  %s1602_s4 = inlined_call_operand.hbm [shape: f32[256,128], index: 4, kind: output, shape index: {1}]  }
   0x1   :  { %12 = vsyncpa [#allocation3 + $0x1], 0 }
   0x2   :  { %13 = vsyncpa [#allocation6], 0 }
   0x3   :  { %14 = vsyncpa [#allocation4], 0 }
   0x4   :  { %16 = vsyncpa [#allocation4 + $0x1], 0 }
   0x5   :  { %17 = vsyncpa [#allocation9], 0 }
   0x6   :  { %19 = vsyncpa [#allocation9 + $0x1], 0  ;;  %s1248_s15 = smov 0   ;;  %s1250_s16 = smov 0  }
   0x7   :  { %s1252_s17 = smov 0   ;;  %s1254_s18 = smov 0  }
   0x8   :  { %s1256_s19 = smov 0   ;;  %s1258_s20 = smov 0  }
   0x9 LB: > { %s795_s21 = sadd.s32 4294967295, %s1211_s20   ;;  %s796_s22 = sadd.s32 4294967294, %s1211_s20   ;;  %s1211_s20 = sphi %s1258_s20, %s25_s20   ;;  %s1207_s19 = sphi %s1256_s19, %s1626_s19   ;;  %s1203_s18 = sphi %s1254_s18, %s1625_s18   ;;  %s1199_s17 = sphi %s1252_s17, %s1624_s17   ;;  %s1195_s16 = sphi %s1250_s16, %s1623_s16   ;;  %s1191_s15 = sphi %s1248_s15, %s1622_s15  }
   0xa   : > { %p59_p0 = scmp.ne.s32.totalorder %s1195_s16, %s1191_s15  ;;  %p1282_p1 = scmp.eq.s32.totalorder %s795_s21, 0 }
   0xb   : > { %p1286_p2 = scmp.eq.s32.totalorder %s795_s21, 1  ;;  %p131_p3 = scmp.eq.s32.totalorder %s796_s22, 1 }
   0xc   : > { %s1607_s23 = scalar_select %p1282_p1, 1, 0 }
   0xd   : > { %s1608_s24 = scalar_select %p1286_p2, 1, 0 }
   0xe   : > { %p1292_p4 = por %p1282_p1, %p59_p0  ;;  %p797_p5 = scmp.ge.s32.totalorder %s1211_s20, 1 }
   0xf   : > { %p1297_p6 = por %p131_p3, %p59_p0  ;;  %p164_p7 = scmp.lt.s32.totalorder %s1211_s20, 3 }
  0x10   : > { %s1609_s25 = scalar_select %p1292_p4, 1, 0 }
  0x11   : > { %s1610_s26 = scalar_select %p1297_p6, 1, 0 }
  0x12   : > { %p1302_p8 = pnand %p797_p5, %p164_p7  ;;  %s1213_s28 = smov [#allocation5]  }
  0x13   : > { %s176_s29 = sshll.u32 %s1213_s28, 4  ;;  %s37_s5 = sadd.s32 1, %s1207_s19  ;;  %s177_s29 = int_to_ptr.vmem [resolvable:$true] %s176_s29 }
  0x14   : > { %s1611_s27 = scalar_select %p1302_p8, 1, 0 }
  0x15   : > { %p960_p9 = pneg %p1302_p8  ;;  %s1035_s8 = scalar_lea.hbm %s1599_s1, 4096 }
  0x16   : > { %p1036_p12 = scmp.ne.s32.totalorder %s1599_s1, %s1035_s8  ;;  %p1042_p5 = scmp.lt.u32.totalorder %s1035_s8, %s1599_s1 }
  0x17   : > { %p1311_p11 = pnand %p960_p9, %p1282_p1 }
  0x19   : > { %p1037_p13 = pneg %p1311_p11 }
  0x1b   : > { %p1038_p0 = pnand %p1037_p13, %p1036_p12 }
  0x1d   : > { %p1039_p3 = pneg %p1038_p0 }
  0x1f   : > { %p1044_p7 = pnand %p1042_p5, %p1039_p3 }
  0x21   : > { %1047 = shalt.err (!%p1044_p7)
}
  0x22   : > { %s1048_s13 = scalar_lea.vmem %s177_s29, 4096  ;;  %p1056_p1 = scmp.lt.s32.totalorder %s177_s29, %s177_s29 }
  0x23   : > { %p1049_p9 = scmp.ne.s32.totalorder %s177_s29, %s1048_s13  ;;  %p1057_p4 = scmp.lt.s32.totalorder %s1048_s13, %s1048_s13 }
  0x25   : > { %p1051_p10 = pnand %p1049_p9, %p1037_p13  ;;  %p1058_p8 = por %p1057_p4, %p1056_p1 }
  0x27   : > { %p1052_p6 = pneg %p1051_p10 }
  0x29   : > { %p1059_p2 = pnand %p1058_p8, %p1052_p6 }
  0x2b   : > { %1062 = shalt.err (!%p1059_p2)
}
  0x2c   : > { %s1214_s14 = smov 128   ;;  %s1215_s21 = smov 8  }
  0x2d   : > { %963 = dma.hbm_to_vmem [thread:$0]  (!%p1311_p11), %s1599_s1, 4096, %s177_s29, [#allocation6], %s1214_s14, %s1214_s14, %s1215_s21  }
  0x2e   : > { %p39_p1 = scmp.ge.s32.totalorder %s37_s5, 2  ;;  %s46_s6 = sadd.s32 1, %s1199_s17 }
  0x2f   : > { %p53_p2 = scmp.ne.s32.totalorder %s1199_s17, %s1195_s16  ;;  %p54_p4 = scmp.eq.s32.totalorder %s1211_s20, 0 }
  0x30   : > { %s1628_s5 = smov (%p39_p1, %s37_s5), 0  ;;  %p1614_p8 = scmp.ne.s32.totalorder %s1608_s24, 0 }
  0x31   : > { %p1338_p6 = por %p54_p4, %p53_p2  ;;  %s41_s30 = ssub.s32 %s1207_s19, %s1628_s5 }
  0x32   : > { %p1344_p10 = por %p1614_p8, %p53_p2  ;;  %p976_p12 = scmp.lt.s32.totalorder %s1211_s20, 2 }
  0x33   : > { %p44_p11 = scmp.eq.s32.totalorder %s41_s30, 0  ;;  %s193_s29 = sand.u32 1, %s1199_s17  }
  0x34   : > { %s800_s9 = sshll.u32 %s193_s29, 8  ;;  %s819_s11 = sshll.u32 %s1207_s19, 12 }
  0x35   : > { %s1353_s10 = scalar_select %p44_p11, %s1199_s17, %s46_s6  }
  0x36   : > { %s1359_s14 = scalar_lea.hbm %s1598_s0, %s819_s11  ;;  %s197_s24 = scalar_lea.vmem [#allocation2], %s800_s9 }
  0x37   : > { %s207_s21 = sshll.u32 %s197_s24, 4  ;;  %p1365_p13 = pnand %p976_p12, %p1338_p6  ;;  %s1361_s21 = int_to_ptr.vmem [resolvable:$true] %s207_s21 }
  0x38   : > { %s1369_s28 = scalar_lea.sflag [#allocation3], %s193_s29  ;;  %s1063_s6 = scalar_lea.hbm %s1359_s14, 4096 }
  0x39   : > { %p1064_p0 = scmp.ne.s32.totalorder %s1359_s14, %s1063_s6  ;;  %p1065_p3 = pneg %p1365_p13 }
  0x3a   : > { %s1068_s7 = scalar_lea.hbm %s1598_s0, 8192  ;;  %p1069_p9 = scmp.lt.u32.totalorder %s1359_s14, %s1598_s0 }
  0x3b   : > { %p1066_p5 = pnand %p1065_p3, %p1064_p0  ;;  %p1070_p1 = scmp.lt.u32.totalorder %s1068_s7, %s1063_s6 }
  0x3c   : > { %p1072_p4 = scmp.lt.u32.totalorder %s1063_s6, %s1359_s14 }
  0x3d   : > { %p1067_p7 = pneg %p1066_p5  ;;  %p1071_p2 = por %p1070_p1, %p1069_p9 }
  0x3f   : > { %p1073_p6 = por %p1072_p4, %p1071_p2 }
  0x41   : > { %p1074_p8 = pnand %p1073_p6, %p1067_p7 }
  0x43   : > { %1077 = shalt.err (!%p1074_p8)
}
  0x44   : > { %s1078_s29 = scalar_lea.vmem %s1361_s21, 4096  ;;  %s1216_s13 = smov [#allocation2]  }
  0x45   : > { %p1079_p12 = scmp.ne.s32.totalorder %s1361_s21, %s1078_s29  ;;  %s1083_s24 = sshll.u32 %s1216_s13, 4  ;;  %s1084_s24 = int_to_ptr.vmem [resolvable:$false] %s1083_s24 }
  0x46   : > { %s1085_s30 = scalar_lea.vmem %s1084_s24, 8192  ;;  %p1086_p5 = scmp.lt.s32.totalorder %s1361_s21, %s1084_s24 }
  0x47   : > { %p1081_p11 = pnand %p1079_p12, %p1065_p3  ;;  %p1087_p9 = scmp.lt.s32.totalorder %s1085_s30, %s1078_s29 }
  0x49   : > { %p1082_p0 = pneg %p1081_p11  ;;  %p1088_p1 = por %p1087_p9, %p1086_p5 }
  0x4b   : > { %p1089_p2 = pnand %p1088_p1, %p1082_p0 }
  0x4d   : > { %1092 = shalt.err (!%p1089_p2)
}
  0x4e   : > { %s1217_s6 = smov 256   ;;  %s1218_s9 = smov 16  }
  0x4f   : > { %967 = dma.hbm_to_vmem [thread:$0]  (!%p1365_p13), %s1359_s14, 4096, %s1361_s21, %s1369_s28, %s1217_s6, %s1217_s6, %s1218_s9  }
  0x50   : > { %p1617_p3 = scmp.ne.s32.totalorder %s1611_s27, 0 }
  0x51   : > { %s1400_s7 = sand.u32 (!%p1617_p3), 1, %s1195_s16   ;;  %p1618_p7 = scmp.ne.s32.totalorder (!%p1617_p3), %s1609_s25, 0 }
  0x52   : > { %219 = sbr.rel (%p1617_p3) target bundleno = 411 (0x19b), region = 32  ;;  %s805_s11 = sshll.u32 (!%p1617_p3), %s1400_s7, 8 }
  0x53   : > { %s222_s12 = scalar_lea.sflag (!%p1617_p3), [#allocation3], %s1400_s7  ;;  %s1404_s29 = scalar_lea.vmem (!%p1617_p3), [#allocation2], %s805_s11 }
  0x59   : > { %1174 = dma.done.wait (%p1618_p7), %s222_s12, 4096  }
  0x5a   : > { %1176 = vsyncadd (%p1618_p7), %s222_s12, 4294963200  ;;  %p1619_p13 = scmp.ne.s32.totalorder %s1607_s23, 0 }
  0x5c   : > { %1178 = dma.done.wait (%p1619_p13), [#allocation6], 4096  }
  0x5d   : > { %1180 = vsyncadd (%p1619_p13), [#allocation6], 4294963200  ;;  %v301_v0 = vld [vmem:[#allocation5 + $0x80] sm:$0xff]  ;;  %v302_v1 = vld [vmem:[#allocation5 + $0x88] sm:$0xff]  ;;  %s807_s23 = sshll.u32 %s1400_s7, 7  ;;  %s820_s22 = sshll.u32 %s1203_s18, 11 }
  0x5e   : > { %v285_v2 = vld [vmem:[#allocation5] sm:$0xff]  ;;  %v902_v3 = vpack.c.bf16 %v302_v1, %v301_v0  ;;  %v286_v4 = vld [vmem:[#allocation5 + $0x8] sm:$0xff]  ;;  %v303_v5 = vld [vmem:[#allocation5 + $0x90] sm:$0xff]  ;;  %s1454_s14 = scalar_lea.vmem [#allocation8], %s807_s23  ;;  %s1458_s21 = scalar_lea.vmem [#allocation7], %s807_s23 }
  0x5f   : > { %v304_v6 = vld [vmem:[#allocation5 + $0x98] sm:$0xff]  ;;  %v904_v7 = vpack.c.bf16 %v286_v4, %v285_v2  ;;  %v287_v9 = vld [vmem:[#allocation5 + $0x10] sm:$0xff]  ;;  %v305_v11 = vld [vmem:[#allocation5 + $0xa0] sm:$0xff]  ;;  %s667_s28 = sshll.u32 %s1454_s14, 4  ;;  %s651_s13 = sshll.u32 %s1458_s21, 4  ;;  %s1508_s28 = int_to_ptr.vmem [resolvable:$true] %s667_s28  ;;  %s1517_s13 = int_to_ptr.vmem [resolvable:$true] %s651_s13 }
  0x60   : > { %v906_v8 = vpack.c.bf16 %v304_v6, %v303_v5  ;;  %v288_v10 = vld [vmem:[#allocation5 + $0x18] sm:$0xff]  ;;  %903 = vmatprep.subr.bf16.mxu0 %v902_v3  ;;  %934 = vmatprep.subr.bf16.mxu1 %v902_v3  ;;  %v306_v12 = vld [vmem:[#allocation5 + $0xa8] sm:$0xff]  ;;  %v289_v15 = vld [vmem:[#allocation5 + $0x20] sm:$0xff]  ;;  %s1506_s6 = scalar_lea.hbm %s1602_s4, %s820_s22  ;;  %s1515_s11 = scalar_lea.hbm %s1601_s3, %s820_s22 }
  0x61   : > { %905 = vmatpush3.bf16.msra.mxu0 %v904_v7  ;;  %942 = vmatpush3.bf16.msra.mxu1 %v904_v7  ;;  %v908_v13 = vpack.c.bf16 %v288_v10, %v287_v9  ;;  %v910_v14 = vpack.c.bf16 %v306_v12, %v305_v11  ;;  %v290_v16 = vld [vmem:[#allocation5 + $0x28] sm:$0xff]  ;;  %v307_v17 = vld [vmem:[#allocation5 + $0xb0] sm:$0xff]  ;;  %v308_v18 = vld [vmem:[#allocation5 + $0xb8] sm:$0xff]  ;;  %s638_s12 = scalar_lea.sflag [#allocation9], %s1400_s7  ;;  %s1219_s23 = smov [#allocation8]  }
  0x62   : > { %907 = vmatprep.subr.bf16.mxu0 %v906_v8  ;;  %935 = vmatprep.subr.bf16.mxu1 %v906_v8  ;;  %v912_v19 = vpack.c.bf16 %v290_v16, %v289_v15  ;;  %v914_v20 = vpack.c.bf16 %v308_v18, %v307_v17  ;;  %v291_v21 = vld [vmem:[#allocation5 + $0x30] sm:$0xff]  ;;  %v292_v22 = vld [vmem:[#allocation5 + $0x38] sm:$0xff]  ;;  %v309_v23 = vld [vmem:[#allocation5 + $0xc0] sm:$0xff]  ;;  %s1097_s25 = sshll.u32 %s1219_s23, 4  ;;  %s1098_s25 = int_to_ptr.vmem [resolvable:$false] %s1097_s25 }
  0x63   : > { %v310_v24 = vld [vmem:[#allocation5 + $0xc8] sm:$0xff]  ;;  %v916_v27 = vpack.c.bf16 %v292_v22, %v291_v21  ;;  %v293_v29 = vld [vmem:[#allocation5 + $0x40] sm:$0xff]  ;;  %v311_v31 = vld [vmem:[#allocation5 + $0xd0] sm:$0xff]  ;;  %s1099_s27 = scalar_lea.vmem %s1098_s25, 4096  ;;  %p1100_p12 = scmp.lt.s32.totalorder %s1508_s28, %s1098_s25 }
  0x64   : > { %v334_v25 = vld [vmem:[%s1404_s29 + $0x8] sm:$0xff]  ;;  %v918_v28 = vpack.c.bf16 %v310_v24, %v309_v23  ;;  %v312_v32 = vld [vmem:[#allocation5 + $0xd8] sm:$0xff]  ;;  %v295_v35 = vld [vmem:[#allocation5 + $0x50] sm:$0xff] }
  0x65   : > { %909 = vmatpush3.bf16.msra.mxu0 %v908_v13  ;;  %943 = vmatpush3.bf16.msra.mxu1 %v908_v13  ;;  %v350_v26 = vld [vmem:[%s1404_s29 + $0x88] sm:$0xff]  ;;  %v922_v34 = vpack.c.bf16 %v312_v32, %v311_v31  ;;  %v296_v36 = vld [vmem:[#allocation5 + $0x58] sm:$0xff]  ;;  %v313_v37 = vld [vmem:[#allocation5 + $0xe0] sm:$0xff] }
  0x66   : > { %911 = vmatprep.subr.bf16.mxu0 %v910_v14  ;;  %936 = vmatprep.subr.bf16.mxu1 %v910_v14  ;;  %v294_v30 = vld [vmem:[#allocation5 + $0x48] sm:$0xff]  ;;  %v924_v39 = vpack.c.bf16 %v296_v36, %v295_v35  ;;  %v297_v41 = vld [vmem:[#allocation5 + $0x60] sm:$0xff]  ;;  %v315_v43 = vld [vmem:[#allocation5 + $0xf0] sm:$0xff] }
  0x67   : > { %429 = vmatprep.mubr.f32.mxu0 %v334_v25  ;;  %469 = vmatprep.mubr.f32.mxu1 %v350_v26  ;;  %v920_v33 = vpack.c.bf16 %v294_v30, %v293_v29  ;;  %v314_v38 = vld [vmem:[#allocation5 + $0xe8] sm:$0xff]  ;;  %v316_v44 = vld [vmem:[#allocation5 + $0xf8] sm:$0xff]  ;;  %v299_v47 = vld [vmem:[#allocation5 + $0x70] sm:$0xff] }
  0x68   : > { %v926_v40 = vpack.c.bf16 %v314_v38, %v313_v37  ;;  %v298_v42 = vld [vmem:[#allocation5 + $0x68] sm:$0xff]  ;;  %v930_v46 = vpack.c.bf16 %v316_v44, %v315_v43  ;;  %v300_v48 = vld [vmem:[#allocation5 + $0x78] sm:$0xff]  ;;  %v333_v50 = vld [vmem:[%s1404_s29] sm:$0xff] }
  0x69   : > { %913 = vmatpush3.bf16.msra.mxu0 %v912_v19  ;;  %944 = vmatpush3.bf16.msra.mxu1 %v912_v19  ;;  %v928_v45 = vpack.c.bf16 %v298_v42, %v297_v41  ;;  %v932_v49 = vpack.c.bf16 %v300_v48, %v299_v47  ;;  %v349_v51 = vld [vmem:[%s1404_s29 + $0x80] sm:$0xff]  ;;  %v336_v52 = vld [vmem:[%s1404_s29 + $0x18] sm:$0xff]  ;;  %v335_v54 = vld [vmem:[%s1404_s29 + $0x10] sm:$0xff] }
  0x6a   : > { %915 = vmatprep.subr.bf16.mxu0 %v914_v20  ;;  %937 = vmatprep.subr.bf16.mxu1 %v914_v20  ;;  %v352_v53 = vld [vmem:[%s1404_s29 + $0x98] sm:$0xff]  ;;  %v351_v55 = vld [vmem:[%s1404_s29 + $0x90] sm:$0xff]  ;;  %v338_v56 = vld [vmem:[%s1404_s29 + $0x28] sm:$0xff] }
  0x6b   : > { %v354_v57 = vld [vmem:[%s1404_s29 + $0xa8] sm:$0xff]  ;;  %v337_v58 = vld [vmem:[%s1404_s29 + $0x20] sm:$0xff]  ;;  %v340_v60 = vld [vmem:[%s1404_s29 + $0x38] sm:$0xff] }
  0x6c   : > { %v353_v59 = vld [vmem:[%s1404_s29 + $0xa0] sm:$0xff]  ;;  %v356_v61 = vld [vmem:[%s1404_s29 + $0xb8] sm:$0xff]  ;;  %v339_v62 = vld [vmem:[%s1404_s29 + $0x30] sm:$0xff] }
  0x6d   : > { %917 = vmatpush3.bf16.msra.mxu0 %v916_v27  ;;  %945 = vmatpush3.bf16.msra.mxu1 %v916_v27  ;;  %v355_v63 = vld [vmem:[%s1404_s29 + $0xb0] sm:$0xff]  ;;  %v342_v0 = vld [vmem:[%s1404_s29 + $0x48] sm:$0xff]  ;;  %v341_v2 = vld [vmem:[%s1404_s29 + $0x40] sm:$0xff] }
  0x6e   : > { %919 = vmatprep.subr.bf16.mxu0 %v918_v28  ;;  %938 = vmatprep.subr.bf16.mxu1 %v918_v28  ;;  %v358_v1 = vld [vmem:[%s1404_s29 + $0xc8] sm:$0xff]  ;;  %v357_v3 = vld [vmem:[%s1404_s29 + $0xc0] sm:$0xff]  ;;  %v344_v4 = vld [vmem:[%s1404_s29 + $0x58] sm:$0xff] }
  0x6f   : > { %v360_v5 = vld [vmem:[%s1404_s29 + $0xd8] sm:$0xff]  ;;  %v343_v6 = vld [vmem:[%s1404_s29 + $0x50] sm:$0xff]  ;;  %v346_v8 = vld [vmem:[%s1404_s29 + $0x68] sm:$0xff] }
  0x70   : > { %v359_v7 = vld [vmem:[%s1404_s29 + $0xd0] sm:$0xff]  ;;  %v362_v9 = vld [vmem:[%s1404_s29 + $0xe8] sm:$0xff]  ;;  %v345_v10 = vld [vmem:[%s1404_s29 + $0x60] sm:$0xff] }
  0x71   : > { %921 = vmatpush3.bf16.msra.mxu0 %v920_v33  ;;  %946 = vmatpush3.bf16.msra.mxu1 %v920_v33  ;;  %v361_v11 = vld [vmem:[%s1404_s29 + $0xe0] sm:$0xff]  ;;  %v348_v12 = vld [vmem:[%s1404_s29 + $0x78] sm:$0xff]  ;;  %v347_v14 = vld [vmem:[%s1404_s29 + $0x70] sm:$0xff] }
  0x72   : > { %923 = vmatprep.subr.bf16.mxu0 %v922_v34  ;;  %939 = vmatprep.subr.bf16.mxu1 %v922_v34  ;;  %v364_v13 = vld [vmem:[%s1404_s29 + $0xf8] sm:$0xff]  ;;  %v363_v15 = vld [vmem:[%s1404_s29 + $0xf0] sm:$0xff]  ;;  %v1450_v22 = vld [vmem:[%s1600_s2] ss:$0 sm:$0xff]  ;;  %s1093_s29 = scalar_lea.vmem %s1508_s28, 2048 }
  0x73   : > { %p1094_p4 = scmp.ne.s32.totalorder %s1508_s28, %s1093_s29  ;;  %p1101_p11 = scmp.lt.s32.totalorder %s1099_s27, %s1093_s29 }
  0x75   : > { %925 = vmatpush3.bf16.msra.mxu0 %v924_v39  ;;  %947 = vmatpush3.bf16.msra.mxu1 %v924_v39  ;;  %p1095_p6 = pnand %p1094_p4, %p1344_p10  ;;  %p1102_p0 = por %p1101_p11, %p1100_p12 }
  0x76   : > { %927 = vmatprep.subr.bf16.mxu0 %v926_v40  ;;  %940 = vmatprep.subr.bf16.mxu1 %v926_v40 }
  0x77   : > { %p1096_p8 = pneg %p1095_p6 }
  0x79   : > { %929 = vmatpush3.bf16.msra.mxu0 %v928_v45  ;;  %948 = vmatpush3.bf16.msra.mxu1 %v928_v45  ;;  %p1103_p5 = pnand %p1102_p0, %p1096_p8 }
  0x7a   : > { %931 = vmatprep.subr.bf16.mxu0 %v930_v46  ;;  %941 = vmatprep.subr.bf16.mxu1 %v930_v46 }
  0x7d   : > { %933 = vmatpush3.bf16.msra.mxu0 %v932_v49  ;;  %949 = vmatpush3.bf16.msra.mxu1 %v932_v49 }
  0x80   : > { %430 = vmatmul.mubr.f32.vlgmr.msra.gmra.mrb[0].mxu0 %v333_v50  ;;  %470 = vmatmul.mubr.f32.vlgmr.msra.gmra.mrb[0].mxu1 %v349_v51 }
  0x81   : > { %434 = vmatprep.mubr.f32.mxu0 %v336_v52  ;;  %474 = vmatprep.mubr.f32.mxu1 %v352_v53 }
  0x84   : > { %435 = vmatmul.mubr.f32.gmra.mrb[2].mxu0 %v335_v54  ;;  %475 = vmatmul.mubr.f32.gmra.mrb[2].mxu1 %v351_v55 }
  0x85   : > { %439 = vmatprep.mubr.f32.mxu0 %v338_v56  ;;  %479 = vmatprep.mubr.f32.mxu1 %v354_v57 }
  0x88   : > { %440 = vmatmul.mubr.f32.gmra.mrb[4].mxu0 %v337_v58  ;;  %480 = vmatmul.mubr.f32.gmra.mrb[4].mxu1 %v353_v59 }
  0x89   : > { %444 = vmatprep.mubr.f32.mxu0 %v340_v60  ;;  %484 = vmatprep.mubr.f32.mxu1 %v356_v61 }
  0x8c   : > { %445 = vmatmul.mubr.f32.gmra.mrb[6].mxu0 %v339_v62  ;;  %485 = vmatmul.mubr.f32.gmra.mrb[6].mxu1 %v355_v63 }
  0x8d   : > { %449 = vmatprep.mubr.f32.mxu0 %v342_v0  ;;  %489 = vmatprep.mubr.f32.mxu1 %v358_v1 }
  0x90   : > { %450 = vmatmul.mubr.f32.gmra.mrb[8].mxu0 %v341_v2  ;;  %490 = vmatmul.mubr.f32.gmra.mrb[8].mxu1 %v357_v3 }
  0x91   : > { %454 = vmatprep.mubr.f32.mxu0 %v344_v4  ;;  %494 = vmatprep.mubr.f32.mxu1 %v360_v5 }
  0x94   : > { %455 = vmatmul.mubr.f32.gmra.mrb[10].mxu0 %v343_v6  ;;  %495 = vmatmul.mubr.f32.gmra.mrb[10].mxu1 %v359_v7 }
  0x95   : > { %459 = vmatprep.mubr.f32.mxu0 %v346_v8  ;;  %499 = vmatprep.mubr.f32.mxu1 %v362_v9 }
  0x98   : > { %460 = vmatmul.mubr.f32.gmra.mrb[12].mxu0 %v345_v10  ;;  %500 = vmatmul.mubr.f32.gmra.mrb[12].mxu1 %v361_v11 }
  0x99   : > { %464 = vmatprep.mubr.f32.mxu0 %v348_v12  ;;  %504 = vmatprep.mubr.f32.mxu1 %v364_v13 }
  0x9c   : > { %465 = vmatmul.mubr.f32.gmra.mrb[14].mxu0 %v347_v14  ;;  %505 = vmatmul.mubr.f32.gmra.mrb[14].mxu1 %v363_v15 }
 0x153   : > { %v854_v16 = vpop.f32.mrb[0].mxu0  ;;  %v878_v17 = vpop.f32.mrb[0].mxu1 }
 0x154   : > { %v855_v18 = vpop.f32.mrb[1].mxu0  ;;  %v879_v19 = vpop.f32.mrb[1].mxu1 }
 0x155   : > { %v856_v20 = vadd.f32 %v855_v18, %v854_v16  ;;  %v880_v21 = vadd.f32 %v879_v19, %v878_v17 }
 0x157   : > { %v857_v23 = vpop.f32.mrb[2].mxu0  ;;  %v881_v24 = vpop.f32.mrb[2].mxu1  ;;  %v568_v27 = vadd.f32 %v856_v20, %v1450_v22  ;;  %v576_v28 = vadd.f32 %v880_v21, %v1450_v22 }
 0x158   : > { %v858_v25 = vpop.f32.mrb[3].mxu0  ;;  %v882_v26 = vpop.f32.mrb[3].mxu1 }
 0x159   : > { %v859_v29 = vadd.f32 %v858_v25, %v857_v23  ;;  %v883_v30 = vadd.f32 %v882_v26, %v881_v24  ;;  %584 = vst [vmem:[%s1454_s14] sm:$0xff] %v568_v27  ;;  %v600_v31 = vmax.f32 %v568_v27, 0.0  ;;  %592 = vst [vmem:[%s1454_s14 + $0x40] sm:$0xff] %v576_v28  ;;  %v608_v32 = vmax.f32 %v576_v28, 0.0 }
 0x15b   : > { %v860_v33 = vpop.f32.mrb[4].mxu0  ;;  %v884_v34 = vpop.f32.mrb[4].mxu1  ;;  %616 = vst [vmem:[%s1458_s21] sm:$0xff] %v600_v31  ;;  %624 = vst [vmem:[%s1458_s21 + $0x40] sm:$0xff] %v608_v32  ;;  %v569_v37 = vadd.f32 %v859_v29, %v1450_v22  ;;  %v577_v38 = vadd.f32 %v883_v30, %v1450_v22 }
 0x15c   : > { %v861_v35 = vpop.f32.mrb[5].mxu0  ;;  %v885_v36 = vpop.f32.mrb[5].mxu1 }
 0x15d   : > { %v862_v39 = vadd.f32 %v861_v35, %v860_v33  ;;  %v886_v40 = vadd.f32 %v885_v36, %v884_v34  ;;  %585 = vst [vmem:[%s1454_s14 + $0x8] sm:$0xff] %v569_v37  ;;  %v601_v41 = vmax.f32 %v569_v37, 0.0  ;;  %593 = vst [vmem:[%s1454_s14 + $0x48] sm:$0xff] %v577_v38  ;;  %v609_v42 = vmax.f32 %v577_v38, 0.0 }
 0x15f   : > { %v863_v43 = vpop.f32.mrb[6].mxu0  ;;  %v887_v44 = vpop.f32.mrb[6].mxu1  ;;  %617 = vst [vmem:[%s1458_s21 + $0x8] sm:$0xff] %v601_v41  ;;  %625 = vst [vmem:[%s1458_s21 + $0x48] sm:$0xff] %v609_v42  ;;  %v570_v47 = vadd.f32 %v862_v39, %v1450_v22  ;;  %v578_v48 = vadd.f32 %v886_v40, %v1450_v22 }
 0x160   : > { %v864_v45 = vpop.f32.mrb[7].mxu0  ;;  %v888_v46 = vpop.f32.mrb[7].mxu1 }
 0x161   : > { %v865_v49 = vadd.f32 %v864_v45, %v863_v43  ;;  %v889_v50 = vadd.f32 %v888_v46, %v887_v44  ;;  %586 = vst [vmem:[%s1454_s14 + $0x10] sm:$0xff] %v570_v47  ;;  %v602_v51 = vmax.f32 %v570_v47, 0.0  ;;  %594 = vst [vmem:[%s1454_s14 + $0x50] sm:$0xff] %v578_v48  ;;  %v610_v52 = vmax.f32 %v578_v48, 0.0 }
 0x163   : > { %v866_v53 = vpop.f32.mrb[8].mxu0  ;;  %v890_v54 = vpop.f32.mrb[8].mxu1  ;;  %618 = vst [vmem:[%s1458_s21 + $0x10] sm:$0xff] %v602_v51  ;;  %626 = vst [vmem:[%s1458_s21 + $0x50] sm:$0xff] %v610_v52  ;;  %v571_v57 = vadd.f32 %v865_v49, %v1450_v22  ;;  %v579_v58 = vadd.f32 %v889_v50, %v1450_v22 }
 0x164   : > { %v867_v55 = vpop.f32.mrb[9].mxu0  ;;  %v891_v56 = vpop.f32.mrb[9].mxu1 }
 0x165   : > { %v868_v59 = vadd.f32 %v867_v55, %v866_v53  ;;  %v892_v60 = vadd.f32 %v891_v56, %v890_v54  ;;  %587 = vst [vmem:[%s1454_s14 + $0x18] sm:$0xff] %v571_v57  ;;  %v603_v61 = vmax.f32 %v571_v57, 0.0  ;;  %595 = vst [vmem:[%s1454_s14 + $0x58] sm:$0xff] %v579_v58  ;;  %v611_v62 = vmax.f32 %v579_v58, 0.0 }
 0x167   : > { %v869_v63 = vpop.f32.mrb[10].mxu0  ;;  %v893_v0 = vpop.f32.mrb[10].mxu1  ;;  %619 = vst [vmem:[%s1458_s21 + $0x18] sm:$0xff] %v603_v61  ;;  %627 = vst [vmem:[%s1458_s21 + $0x58] sm:$0xff] %v611_v62  ;;  %v572_v3 = vadd.f32 %v868_v59, %v1450_v22  ;;  %v580_v4 = vadd.f32 %v892_v60, %v1450_v22 }
 0x168   : > { %v870_v1 = vpop.f32.mrb[11].mxu0  ;;  %v894_v2 = vpop.f32.mrb[11].mxu1 }
 0x169   : > { %v871_v5 = vadd.f32 %v870_v1, %v869_v63  ;;  %v895_v6 = vadd.f32 %v894_v2, %v893_v0  ;;  %588 = vst [vmem:[%s1454_s14 + $0x20] sm:$0xff] %v572_v3  ;;  %v604_v7 = vmax.f32 %v572_v3, 0.0  ;;  %596 = vst [vmem:[%s1454_s14 + $0x60] sm:$0xff] %v580_v4  ;;  %v612_v8 = vmax.f32 %v580_v4, 0.0 }
 0x16b   : > { %v872_v9 = vpop.f32.mrb[12].mxu0  ;;  %v896_v10 = vpop.f32.mrb[12].mxu1  ;;  %620 = vst [vmem:[%s1458_s21 + $0x20] sm:$0xff] %v604_v7  ;;  %628 = vst [vmem:[%s1458_s21 + $0x60] sm:$0xff] %v612_v8  ;;  %v573_v13 = vadd.f32 %v871_v5, %v1450_v22  ;;  %v581_v14 = vadd.f32 %v895_v6, %v1450_v22 }
 0x16c   : > { %v873_v11 = vpop.f32.mrb[13].mxu0  ;;  %v897_v12 = vpop.f32.mrb[13].mxu1 }
 0x16d   : > { %v874_v15 = vadd.f32 %v873_v11, %v872_v9  ;;  %v898_v16 = vadd.f32 %v897_v12, %v896_v10  ;;  %589 = vst [vmem:[%s1454_s14 + $0x28] sm:$0xff] %v573_v13  ;;  %v605_v17 = vmax.f32 %v573_v13, 0.0  ;;  %597 = vst [vmem:[%s1454_s14 + $0x68] sm:$0xff] %v581_v14  ;;  %v613_v18 = vmax.f32 %v581_v14, 0.0 }
 0x16f   : > { %v875_v19 = vpop.f32.mrb[14].mxu0  ;;  %v899_v20 = vpop.f32.mrb[14].mxu1  ;;  %621 = vst [vmem:[%s1458_s21 + $0x28] sm:$0xff] %v605_v17  ;;  %629 = vst [vmem:[%s1458_s21 + $0x68] sm:$0xff] %v613_v18  ;;  %v574_v24 = vadd.f32 %v874_v15, %v1450_v22  ;;  %v582_v25 = vadd.f32 %v898_v16, %v1450_v22 }
 0x170   : > { %v876_v21 = vpop.f32.mrb[15].mxu0  ;;  %v900_v23 = vpop.f32.mrb[15].mxu1 }
 0x171   : > { %v877_v26 = vadd.f32 %v876_v21, %v875_v19  ;;  %v901_v27 = vadd.f32 %v900_v23, %v899_v20  ;;  %590 = vst [vmem:[%s1454_s14 + $0x30] sm:$0xff] %v574_v24  ;;  %v606_v28 = vmax.f32 %v574_v24, 0.0  ;;  %598 = vst [vmem:[%s1454_s14 + $0x70] sm:$0xff] %v582_v25  ;;  %v614_v29 = vmax.f32 %v582_v25, 0.0 }
 0x173   : > { %622 = vst [vmem:[%s1458_s21 + $0x30] sm:$0xff] %v606_v28  ;;  %630 = vst [vmem:[%s1458_s21 + $0x70] sm:$0xff] %v614_v29  ;;  %v575_v30 = vadd.f32 %v877_v26, %v1450_v22  ;;  %v583_v31 = vadd.f32 %v901_v27, %v1450_v22 }
 0x175   : > { %591 = vst [vmem:[%s1454_s14 + $0x38] sm:$0xff] %v575_v30  ;;  %v607_v32 = vmax.f32 %v575_v30, 0.0  ;;  %599 = vst [vmem:[%s1454_s14 + $0x78] sm:$0xff] %v583_v31  ;;  %v615_v33 = vmax.f32 %v583_v31, 0.0 }
 0x176   : > { %1106 = shalt.err (!%p1103_p5)
}
 0x177   : > { %s1107_s14 = scalar_lea.hbm %s1506_s6, 2048  ;;  %s1111_s30 = scalar_lea.hbm %s1602_s4, 4096 }
 0x178   : > { %p1108_p9 = scmp.ne.s32.totalorder %s1506_s6, %s1107_s14  ;;  %p1112_p3 = scmp.lt.u32.totalorder %s1506_s6, %s1602_s4 }
 0x179   : > { %p1113_p7 = scmp.lt.u32.totalorder %s1111_s30, %s1107_s14  ;;  %p1115_p4 = scmp.lt.u32.totalorder %s1107_s14, %s1506_s6 }
 0x17a   : > { %p1109_p1 = pnand %p1108_p9, %p1344_p10 }
 0x17b   : > { %p1114_p13 = por %p1113_p7, %p1112_p3 }
 0x17c   : > { %p1110_p2 = pneg %p1109_p1 }
 0x17d   : > { %p1116_p6 = por %p1115_p4, %p1114_p13 }
 0x17f   : > { %p1117_p8 = pnand %p1116_p6, %p1110_p2 }
 0x181   : > { %1120 = shalt.err (!%p1117_p8)
}
 0x182   : > { %s1220_s29 = smov 128   ;;  %s1221_s23 = smov 8   ;;  %623 = vst [vmem:[%s1458_s21 + $0x38] sm:$0xff] %v607_v32  ;;  %631 = vst [vmem:[%s1458_s21 + $0x78] sm:$0xff] %v615_v33 }
 0x183   : > { %957 = dma.vmem_to_hbm [thread:$0]  (%p1344_p10), %s1508_s28, 2048, %s1506_s6, %s638_s12, %s1220_s29, %s1220_s29, %s1221_s23  }
 0x184   : > { %s633_s25 = scalar_lea.sflag [#allocation4], %s1400_s7  ;;  %s1121_s27 = scalar_lea.vmem %s1517_s13, 2048 }
 0x185   : > { %p1122_p12 = scmp.ne.s32.totalorder %s1517_s13, %s1121_s27  ;;  %s1222_s14 = smov [#allocation7]  }
 0x186   : > { %s1125_s22 = sshll.u32 %s1222_s14, 4  ;;  %s1126_s22 = int_to_ptr.vmem [resolvable:$false] %s1125_s22 }
 0x187   : > { %p1123_p11 = pnand %p1122_p12, %p1344_p10  ;;  %s1127_s24 = scalar_lea.vmem %s1126_s22, 4096 }
 0x188   : > { %p1128_p5 = scmp.lt.s32.totalorder %s1517_s13, %s1126_s22  ;;  %p1129_p9 = scmp.lt.s32.totalorder %s1127_s24, %s1121_s27 }
 0x189   : > { %p1124_p0 = pneg %p1123_p11 }
 0x18a   : > { %p1130_p1 = por %p1129_p9, %p1128_p5 }
 0x18c   : > { %p1131_p2 = pnand %p1130_p1, %p1124_p0 }
 0x18e   : > { %1134 = shalt.err (!%p1131_p2)
}
 0x18f   : > { %s1135_s21 = scalar_lea.hbm %s1515_s11, 2048  ;;  %s1139_s12 = scalar_lea.hbm %s1601_s3, 4096 }
 0x190   : > { %p1136_p3 = scmp.ne.s32.totalorder %s1515_s11, %s1135_s21  ;;  %p1140_p4 = scmp.lt.u32.totalorder %s1515_s11, %s1601_s3 }
 0x191   : > { %p1141_p6 = scmp.lt.u32.totalorder %s1139_s12, %s1135_s21  ;;  %p1143_p12 = scmp.lt.u32.totalorder %s1135_s21, %s1515_s11 }
 0x192   : > { %p1137_p7 = pnand %p1136_p3, %p1344_p10 }
 0x193   : > { %p1142_p8 = por %p1141_p6, %p1140_p4 }
 0x194   : > { %p1138_p13 = pneg %p1137_p7 }
 0x195   : > { %p1144_p11 = por %p1143_p12, %p1142_p8 }
 0x197   : > { %p1145_p0 = pnand %p1144_p11, %p1138_p13 }
 0x199   : > { %1148 = shalt.err (!%p1145_p0)
}
 0x19a   : > { %956 = dma.vmem_to_hbm [thread:$0]  (%p1344_p10), %s1517_s13, 2048, %s1515_s11, %s633_s25, %s1220_s29, %s1220_s29, %s1221_s23  }
 0x19b PF: > { %s682_s9 = sand.u32 1, %s1191_s15   ;;  %p1620_p5 = scmp.ne.s32.totalorder %s1610_s26, 0 }
 0x19c   : > { %p1621_p9 = scmp.ge.s32.totalorder %s1211_s20, 2  ;;  %s683_s27 = scalar_lea.sflag [#allocation4], %s682_s9 }
 0x19e   : > { %p969_p1 = pnand %p1621_p9, %p1620_p5 }
 0x1a0   : > { %1182 = dma.done.wait (!%p969_p1), %s683_s27, 2048  }
 0x1a1   : > { %1184 = vsyncadd (!%p969_p1), %s683_s27, 4294965248  ;;  %s692_s8 = scalar_lea.sflag [#allocation9], %s682_s9 }
 0x1a2   : > { %1186 = dma.done.wait (!%p969_p1), %s692_s8, 2048  }
 0x1a3   : > { %1188 = vsyncadd (!%p969_p1), %s692_s8, 4294965248  ;;  %s25_s20 = sadd.s32 1, %s1211_s20   ;;  %s1622_s15 = smov %s1195_s16 }
 0x1a4   : > { %p22_p2 = scmp.ge.s32.totalorder %s25_s20, 4   ;;  %s1623_s16 = smov %s1199_s17 }
 0x1a5   : > { %s1624_s17 = smov %s1353_s10  ;;  %s1625_s18 = smov %s1207_s19 }
 0x1a6   : > { %s1626_s19 = smov %s1628_s5  ;;  %24 = sbr.rel (!%p22_p2) target bundleno = 9 (0x9), region = 107 }
 0x1ad   :  { %697 = vsyncpa [#allocation3], 1 }
 0x1ae   :  { %699 = vsyncpa [#allocation3 + $0x1], 1 }
 0x1af   :  { %700 = vsyncpa [#allocation6], 1 }
 0x1b0   :  { %701 = vsyncpa [#allocation4], 1 }
 0x1b1   :  { %703 = vsyncpa [#allocation4 + $0x1], 1 }
 0x1b2   :  { %704 = vsyncpa [#allocation9], 1 }
 0x1b3   :  { %706 = vsyncpa [#allocation9 + $0x1], 1 }

</bundles_post_ra>
